<compile_context>
chip_gen: v5e
topology: v5e:2x2
jax: 0.10.0
libtpu: 0.0.40
codegen_flags: <defaults>
</compile_context>

<pallas_src>
import jax
import jax.numpy as jnp
from jax.experimental import pallas as pl
from jax.experimental.pallas import tpu as pltpu

# Module hyperparameters (DiceFocalLoss defaults).
W_DICE = 0.5
W_FOCAL = 0.5
ALPHA = 0.8
GAMMA = 2.0
SMOOTH = 1.0

LANE = 128
MAX_TILE_ROWS = 1024     # 1024 x 128 f32 = 512 KiB per input block
NUM_CORE_SPLITS = 2      # v7x: shard across 2 TCs; harmless on v5e/v6e
PAD_LOGIT = -1.0e4       # sigmoid->0, BCE->0, focal->0: padding contributes 0


def _dice_focal_kernel(p_ref, t_ref, o_ref):
    """Accumulates four partial sums into the VMEM-resident output block.

    o_ref block: (32, LANE) f32, one (8, LANE) slab per quantity:
      rows  0: 7  -> sum(sigmoid(p) * t)
      rows  8:15 -> sum(sigmoid(p))
      rows 16:23 -> sum(t)
      rows 24:31 -> sum(alpha * (1 - pt)^gamma * bce)
    Only grouped-sublane (VPU add) reduction happens here; the final
    (8, LANE) -> scalar reduction is done in the wrapper epilogue.
    """
    @pl.when(pl.program_id(1) == 0)
    def _():
        o_ref[...] = jnp.zeros_like(o_ref)

    p = p_ref[...].astype(jnp.float32)
    t = t_ref[...].astype(jnp.float32)

    # One shared transcendental e = exp(-|p|) feeds both sigmoid and the
    # numerically-stable BCEWithLogits (same formulation torch uses):
    #   b = max(p, 0) - p*t + log1p(exp(-|p|))
    e = jnp.exp(-jnp.abs(p))
    inv = 1.0 / (1.0 + e)
    sig = jnp.where(p >= 0.0, inv, e * inv)          # == sigmoid(p)
    b = jnp.maximum(p, 0.0) - p * t + jnp.log1p(e)   # BCEWithLogits, 'none'
    pt = jnp.exp(-b)                                 # exact module semantics
    one_m_pt = jnp.maximum(1.0 - pt, 0.0)
    if GAMMA == 2.0:
        mod = jnp.square(one_m_pt)                   # avoid float pow (exp+log)
    else:
        mod = one_m_pt ** GAMMA
    focal = ALPHA * mod * b

    rows = p.shape[0]

    def part(x):
        # (rows, LANE) -> (8, LANE) using only full-vreg VPU adds.
        return jnp.sum(x.reshape(rows // 8, 8, LANE), axis=0)

    o_ref[0:8, :] = o_ref[0:8, :] + part(sig * t)
    o_ref[8:16, :] = o_ref[8:16, :] + part(sig)
    o_ref[16:24, :] = o_ref[16:24, :] + part(t)
    o_ref[24:32, :] = o_ref[24:32, :] + part(focal)


def dice_focal_loss(p, t):
    """DiceFocalLoss forward. p: logits, t: targets (same shape). Returns scalar f32."""
    n = p.size
    p_flat = p.reshape(-1)
    t_flat = t.reshape(-1)

    rows = pl.cdiv(n, LANE)
    tile_rows = min(MAX_TILE_ROWS, ((rows + 7) // 8) * 8)
    steps_total = pl.cdiv(rows, tile_rows)
    steps_per_core = pl.cdiv(steps_total, NUM_CORE_SPLITS)
    rows_pad = NUM_CORE_SPLITS * steps_per_core * tile_rows
    pad = rows_pad * LANE - n

    if pad:
        p_flat = jnp.pad(p_flat, (0, pad), constant_values=PAD_LOGIT)
        t_flat = jnp.pad(t_flat, (0, pad))
    p2 = p_flat.reshape(rows_pad, LANE)
    t2 = t_flat.reshape(rows_pad, LANE)

    grid = (NUM_CORE_SPLITS, steps_per_core)

    acc = pl.pallas_call(
        _dice_focal_kernel,
        out_shape=jax.ShapeDtypeStruct((NUM_CORE_SPLITS * 32, LANE), jnp.float32),
        grid_spec=pltpu.PrefetchScalarGridSpec(
            num_scalar_prefetch=0,
            grid=grid,
            in_specs=[
                pl.BlockSpec((tile_rows, LANE),
                             lambda c, i: (c * steps_per_core + i, 0)),
                pl.BlockSpec((tile_rows, LANE),
                             lambda c, i: (c * steps_per_core + i, 0)),
            ],
            out_specs=pl.BlockSpec((32, LANE), lambda c, i: (c, 0)),
        ),
        compiler_params=pltpu.CompilerParams(
            dimension_semantics=("parallel", "arbitrary"),
            vmem_limit_bytes=32 * 1024 * 1024),
    )(p2, t2)

    # Tiny epilogue: (2*32, 128) partials -> 4 scalars -> loss.
    sums = jnp.sum(acc.reshape(NUM_CORE_SPLITS, 4, 8, LANE), axis=(0, 2, 3))
    inter, p_sum, t_sum, focal_sum = sums[0], sums[1], sums[2], sums[3]

    dice = 1.0 - (2.0 * inter + SMOOTH) / (p_sum + t_sum + SMOOTH)
    focal = focal_sum / n
    return W_DICE * dice + W_FOCAL * focal


def _reference(p, t):
    """Pure-JAX reference mirroring the PyTorch module."""
    p = p.astype(jnp.float32)
    t = t.astype(jnp.float32)
    sig = jax.nn.sigmoid(p).reshape(-1)
    tf = t.reshape(-1)
    inter = jnp.sum(sig * tf)
    dice = 1.0 - (2.0 * inter + SMOOTH) / (jnp.sum(sig) + jnp.sum(tf) + SMOOTH)
    b = jnp.maximum(p, 0.0) - p * t + jnp.log1p(jnp.exp(-jnp.abs(p)))
    pt = jnp.exp(-b)
    focal = jnp.mean(ALPHA * (1.0 - pt) ** GAMMA * b)
    return W_DICE * dice + W_FOCAL * focal


if __name__ == "__main__":
    key = jax.random.PRNGKey(0)
    k1, k2 = jax.random.split(key)

    # Small segmentation-like shapes: logits and binary targets, NCHW.
    shape = (2, 4, 16, 16)
    p = jax.random.normal(k1, shape, dtype=jnp.float32) * 2.0
    t = jax.random.bernoulli(k2, p=0.3, shape=shape).astype(jnp.float32)

    loss = jax.block_until_ready(dice_focal_loss(p, t))
    ref = jax.block_until_ready(_reference(p, t))

    if not jnp.allclose(loss, ref, rtol=1e-5, atol=1e-5):
        raise AssertionError(f"mismatch: kernel={loss} ref={ref}")

    print("KERNEL_OK")
</pallas_src>

<mosaic_0001>
module attributes {stable_mosaic.version = 11 : i64} {
  func.func @_dice_focal_kernel(%arg0: i32, %arg1: i32, %arg2: memref<16x128xf32, #tpu.memory_space<vmem>>, %arg3: memref<16x128xf32, #tpu.memory_space<vmem>>, %arg4: memref<32x128xf32, #tpu.memory_space<vmem>>) attributes {dimension_semantics = [#tpu.dimension_semantics<parallel>, #tpu.dimension_semantics<arbitrary>], iteration_bounds = array<i64: 2, 1>, scalar_prefetch = 0 : i64, scratch_operands = 0 : i64, tpu.core_type = #tpu.core_type<tc>, window_params = [{transform_indices = @transform_0, window_bounds = array<i64: 16, 128>}, {transform_indices = @transform_1, window_bounds = array<i64: 16, 128>}, {transform_indices = @transform_2, window_bounds = array<i64: 32, 128>}]} {
    %c0_i32 = arith.constant 0 : i32
    %0 = arith.cmpi eq, %arg1, %c0_i32 : i32
    %1 = arith.extui %0 : i1 to i32
    %c0_i32_0 = arith.constant 0 : i32
    %2 = arith.cmpi ne, %1, %c0_i32_0 : i32
    scf.if %2 {
      %cst_29 = arith.constant 0.000000e+00 : f32
      %55 = vector.broadcast %cst_29 : f32 to vector<32x128xf32>
      %c0_30 = arith.constant 0 : index
      %c0_31 = arith.constant 0 : index
      %56 = vector.load %arg4[%c0_30, %c0_31] : memref<32x128xf32, #tpu.memory_space<vmem>>, vector<32x128xf32>
      tpu.vector_store %arg4[%c0_30, %c0_31], %55 {strides = array<i32>} : memref<32x128xf32, #tpu.memory_space<vmem>>, vector<32x128xf32>,
    } else {
    }
    %c0 = arith.constant 0 : index
    %c0_1 = arith.constant 0 : index
    %3 = vector.load %arg2[%c0, %c0_1] : memref<16x128xf32, #tpu.memory_space<vmem>>, vector<16x128xf32>
    %c0_2 = arith.constant 0 : index
    %c0_3 = arith.constant 0 : index
    %4 = vector.load %arg3[%c0_2, %c0_3] : memref<16x128xf32, #tpu.memory_space<vmem>>, vector<16x128xf32>
    %5 = math.absf %3 : vector<16x128xf32>
    %cst = arith.constant 0.000000e+00 : f32
    %6 = vector.broadcast %cst : f32 to vector<16x128xf32>
    %7 = arith.subf %6, %5 : vector<16x128xf32>
    %8 = math.exp %7 : vector<16x128xf32>
    %cst_4 = arith.constant 1.000000e+00 : f32
    %9 = vector.broadcast %cst_4 : f32 to vector<16x128xf32>
    %10 = arith.addf %9, %8 : vector<16x128xf32>
    %cst_5 = arith.constant 1.000000e+00 : f32
    %11 = vector.broadcast %cst_5 : f32 to vector<16x128xf32>
    %12 = arith.divf %11, %10 : vector<16x128xf32>
    %cst_6 = arith.constant 0.000000e+00 : f32
    %13 = vector.broadcast %cst_6 : f32 to vector<16x128xf32>
    %14 = arith.cmpf oge, %3, %13 : vector<16x128xf32>
    %15 = arith.mulf %8, %12 : vector<16x128xf32>
    %16 = arith.select %14, %12, %15 : vector<16x128xi1>, vector<16x128xf32>
    %cst_7 = arith.constant 0.000000e+00 : f32
    %17 = vector.broadcast %cst_7 : f32 to vector<16x128xf32>
    %18 = arith.maximumf %3, %17 : vector<16x128xf32>
    %19 = arith.mulf %3, %4 : vector<16x128xf32>
    %20 = arith.subf %18, %19 : vector<16x128xf32>
    %21 = math.log1p %8 : vector<16x128xf32>
    %22 = arith.addf %20, %21 : vector<16x128xf32>
    %cst_8 = arith.constant 0.000000e+00 : f32
    %23 = vector.broadcast %cst_8 : f32 to vector<16x128xf32>
    %24 = arith.subf %23, %22 : vector<16x128xf32>
    %25 = math.exp %24 : vector<16x128xf32>
    %cst_9 = arith.constant 1.000000e+00 : f32
    %26 = vector.broadcast %cst_9 : f32 to vector<16x128xf32>
    %27 = arith.subf %26, %25 : vector<16x128xf32>
    %cst_10 = arith.constant 0.000000e+00 : f32
    %28 = vector.broadcast %cst_10 : f32 to vector<16x128xf32>
    %29 = arith.maximumf %27, %28 : vector<16x128xf32>
    %30 = arith.mulf %29, %29 : vector<16x128xf32>
    %cst_11 = arith.constant 8.000000e-01 : f32
    %31 = vector.broadcast %cst_11 : f32 to vector<16x128xf32>
    %32 = arith.mulf %31, %30 : vector<16x128xf32>
    %33 = arith.mulf %32, %22 : vector<16x128xf32>
    %c0_12 = arith.constant 0 : index
    %c0_13 = arith.constant 0 : index
    %34 = vector.load %arg4[%c0_12, %c0_13] : memref<32x128xf32, #tpu.memory_space<vmem>>, vector<8x128xf32>
    %35 = arith.mulf %16, %4 : vector<16x128xf32>
    %36 = vector.shape_cast %35 : vector<16x128xf32> to vector<2x8x128xf32>
    %cst_14 = arith.constant dense<0.000000e+00> : vector<8x128xf32>
    %37 = vector.multi_reduction <add>, %36, %cst_14 [0] : vector<2x8x128xf32> to vector<8x128xf32>
    %38 = arith.addf %34, %37 : vector<8x128xf32>
    %c0_15 = arith.constant 0 : index
    %c0_16 = arith.constant 0 : index
    %39 = vector.load %arg4[%c0_15, %c0_16] : memref<32x128xf32, #tpu.memory_space<vmem>>, vector<8x128xf32>
    tpu.vector_store %arg4[%c0_15, %c0_16], %38 {strides = array<i32>} : memref<32x128xf32, #tpu.memory_space<vmem>>, vector<8x128xf32>,
    %c8 = arith.constant 8 : index
    %c0_17 = arith.constant 0 : index
    %40 = vector.load %arg4[%c8, %c0_17] : memref<32x128xf32, #tpu.memory_space<vmem>>, vector<8x128xf32>
    %41 = vector.shape_cast %16 : vector<16x128xf32> to vector<2x8x128xf32>
    %cst_18 = arith.constant dense<0.000000e+00> : vector<8x128xf32>
    %42 = vector.multi_reduction <add>, %41, %cst_18 [0] : vector<2x8x128xf32> to vector<8x128xf32>
    %43 = arith.addf %40, %42 : vector<8x128xf32>
    %c8_19 = arith.constant 8 : index
    %c0_20 = arith.constant 0 : index
    %44 = vector.load %arg4[%c8_19, %c0_20] : memref<32x128xf32, #tpu.memory_space<vmem>>, vector<8x128xf32>
    tpu.vector_store %arg4[%c8_19, %c0_20], %43 {strides = array<i32>} : memref<32x128xf32, #tpu.memory_space<vmem>>, vector<8x128xf32>,
    %c16 = arith.constant 16 : index
    %c0_21 = arith.constant 0 : index
    %45 = vector.load %arg4[%c16, %c0_21] : memref<32x128xf32, #tpu.memory_space<vmem>>, vector<8x128xf32>
    %46 = vector.shape_cast %4 : vector<16x128xf32> to vector<2x8x128xf32>
    %cst_22 = arith.constant dense<0.000000e+00> : vector<8x128xf32>
    %47 = vector.multi_reduction <add>, %46, %cst_22 [0] : vector<2x8x128xf32> to vector<8x128xf32>
    %48 = arith.addf %45, %47 : vector<8x128xf32>
    %c16_23 = arith.constant 16 : index
    %c0_24 = arith.constant 0 : index
    %49 = vector.load %arg4[%c16_23, %c0_24] : memref<32x128xf32, #tpu.memory_space<vmem>>, vector<8x128xf32>
    tpu.vector_store %arg4[%c16_23, %c0_24], %48 {strides = array<i32>} : memref<32x128xf32, #tpu.memory_space<vmem>>, vector<8x128xf32>,
    %c24 = arith.constant 24 : index
    %c0_25 = arith.constant 0 : index
    %50 = vector.load %arg4[%c24, %c0_25] : memref<32x128xf32, #tpu.memory_space<vmem>>, vector<8x128xf32>
    %51 = vector.shape_cast %33 : vector<16x128xf32> to vector<2x8x128xf32>
    %cst_26 = arith.constant dense<0.000000e+00> : vector<8x128xf32>
    %52 = vector.multi_reduction <add>, %51, %cst_26 [0] : vector<2x8x128xf32> to vector<8x128xf32>
    %53 = arith.addf %50, %52 : vector<8x128xf32>
    %c24_27 = arith.constant 24 : index
    %c0_28 = arith.constant 0 : index
    %54 = vector.load %arg4[%c24_27, %c0_28] : memref<32x128xf32, #tpu.memory_space<vmem>>, vector<8x128xf32>
    tpu.vector_store %arg4[%c24_27, %c0_28], %53 {strides = array<i32>} : memref<32x128xf32, #tpu.memory_space<vmem>>, vector<8x128xf32>,
    return
  }
  func.func @transform_0(%arg0: i32, %arg1: i32) -> (i32, i32) {
    %c1_i32 = arith.constant 1 : i32
    %0 = arith.muli %arg0, %c1_i32 : i32
    %1 = arith.addi %0, %arg1 : i32
    %c0_i32 = arith.constant 0 : i32
    %c0_i32_0 = arith.constant 0 : i32
    return %1, %c0_i32 : i32, i32
  }
  func.func @transform_1(%arg0: i32, %arg1: i32) -> (i32, i32) {
    %c1_i32 = arith.constant 1 : i32
    %0 = arith.muli %arg0, %c1_i32 : i32
    %1 = arith.addi %0, %arg1 : i32
    %c0_i32 = arith.constant 0 : i32
    %c0_i32_0 = arith.constant 0 : i32
    return %1, %c0_i32 : i32, i32
  }
  func.func @transform_2(%arg0: i32, %arg1: i32) -> (i32, i32) {
    %c0_i32 = arith.constant 0 : i32
    %c0_i32_0 = arith.constant 0 : i32
    return %arg0, %c0_i32 : i32, i32
  }
}

</mosaic_0001>

<bundles_post_ra>
// kernel: tpu_custom_call.1
= control target key start
LH: loop header
LB: loop body
LE: loop exit
PB: predicated region body
PF: predicated region fallthrough
CT: control target
= control target key end

     0   :  { %7 = vsyncpa [#allocation3], 0  ;;  %s951_s0 = inlined_call_operand.hbm [shape: f32[32,128], index: 0, kind: input, shape index: {}]   ;;  %s952_s1 = inlined_call_operand.hbm [shape: f32[32,128], index: 1, kind: input, shape index: {}]   ;;  %s953_s2 = inlined_call_operand.hbm [shape: f32[64,128], index: 2, kind: output, shape index: {}]  }
   0x1   :  { %9 = vsyncpa [#allocation3 + $0x1], 0 }
   0x2   :  { %10 = vsyncpa [#allocation6], 0 }
   0x3   :  { %12 = vsyncpa [#allocation6 + $0x1], 0 }
   0x4   :  { %13 = vsyncpa [#allocation4], 0 }
   0x5   :  { %15 = vsyncpa [#allocation4 + $0x1], 0  ;;  %s746_s9 = smov 0   ;;  %s748_s10 = smov 0  }
   0x6   :  { %s750_s11 = smov 0   ;;  %s752_s12 = smov 0  }
   0x7   :  { %s754_s13 = smov 0   ;;  %s756_s14 = smov 0  }
   0x8 LB: > { %s469_s15 = sadd.s32 4294967295, %s725_s14   ;;  %s470_s16 = sadd.s32 4294967294, %s725_s14   ;;  %s725_s14 = sphi %s756_s14, %s21_s14   ;;  %s721_s13 = sphi %s754_s13, %s969_s13   ;;  %s717_s12 = sphi %s752_s12, %s968_s12   ;;  %s713_s11 = sphi %s750_s11, %s967_s11   ;;  %s709_s10 = sphi %s748_s10, %s966_s10   ;;  %s705_s9 = sphi %s746_s9, %s965_s9  }
   0x9   : > { %s33_s17 = sadd.s32 1, %s721_s13  ;;  %s42_s18 = sadd.s32 1, %s713_s11 }
   0xa   : > { %p35_p0 = scmp.ge.s32.totalorder %s33_s17, 2  ;;  %p49_p1 = scmp.ne.s32.totalorder %s713_s11, %s709_s10 }
   0xb   : > { %p50_p2 = scmp.eq.s32.totalorder %s725_s14, 0  ;;  %p55_p3 = scmp.ne.s32.totalorder %s709_s10, %s705_s9 }
   0xc   : > { %s971_s17 = smov (%p35_p0, %s33_s17), 0  ;;  %p56_p5 = scmp.eq.s32.totalorder %s469_s15, 0 }
   0xd   : > { %p787_p4 = por %p50_p2, %p49_p1  ;;  %s39_s20 = ssub.s32 %s721_s13, %s971_s17 }
   0xe   : > { %p107_p6 = scmp.eq.s32.totalorder %s469_s15, 1  ;;  %p40_p7 = scmp.eq.s32.totalorder %s39_s20, 0 }
   0xf   : > { %p793_p8 = por %p56_p5, %p55_p3  ;;  %p113_p10 = scmp.eq.s32.totalorder %s470_s16, 1 }
  0x10   : > { %p797_p9 = por %p107_p6, %p49_p1  ;;  %p472_p12 = scmp.ge.s32.totalorder %s725_s14, 2 }
  0x11   : > { %s802_s23 = scalar_select %p40_p7, %s713_s11, %s42_s18  }
  0x12   : > { %p804_p11 = por %p113_p10, %p55_p3  ;;  %p508_p13 = scmp.lt.s32.totalorder %s725_s14, 2 }
  0x13   : > { %s811_s25 = sand.u32 1, %s713_s11   ;;  %s488_s27 = sshll.u32 %s721_s13, 4 }
  0x14   : > { %s473_s26 = sshll.u32 %s811_s25, 4  ;;  %s143_s30 = scalar_lea.hbm %s951_s0, %s488_s27 }
  0x15   : > { %s137_s3 = scalar_lea.vmem [#allocation2], %s473_s26  ;;  %s144_s5 = sshll.u32 %s143_s30, 4  ;;  %s145_s5 = int_to_ptr.hbm [resolvable:$true] %s144_s5 }
  0x16   : > { %s146_s4 = sshll.u32 %s137_s3, 4  ;;  %p820_p0 = pnand %p508_p13, %p787_p4  ;;  %s147_s4 = int_to_ptr.vmem [resolvable:$true] %s146_s4 }
  0x17   : > { %p479_p1 = scmp.ge.s32.totalorder %s725_s14, 1  ;;  %s134_s7 = scalar_lea.sflag [#allocation3], %s811_s25 }
  0x18   : > { %s727_s8 = smov 128   ;;  %s728_s15 = smov 8  }
  0x19   : > { %500 = dma.hbm_to_vmem [thread:$0]  (!%p820_p0), %s145_s5, 256, %s147_s4, %s134_s7, %s727_s8, %s727_s8, %s728_s15  }
  0x1a   : > { %p177_p2 = scmp.lt.s32.totalorder %s725_s14, 3  ;;  %s166_s20 = scalar_lea.hbm %s952_s1, %s488_s27 }
  0x1b   : > { %s167_s28 = sshll.u32 %s166_s20, 4  ;;  %s160_s19 = scalar_lea.vmem [#allocation5], %s473_s26  ;;  %s168_s28 = int_to_ptr.hbm [resolvable:$true] %s167_s28 }
  0x1c   : > { %p178_p3 = pnand %p479_p1, %p177_p2  ;;  %s169_s29 = sshll.u32 %s160_s19, 4  ;;  %s170_s29 = int_to_ptr.vmem [resolvable:$true] %s169_s29 }
  0x1d   : > { %s157_s30 = scalar_lea.sflag [#allocation6], %s811_s25  ;;  %s836_s3 = sand.u32 (!%p178_p3), 1, %s709_s10  }
  0x1e   : > { %503 = dma.hbm_to_vmem [thread:$0]  (!%p820_p0), %s168_s28, 256, %s170_s29, %s157_s30, %s727_s8, %s727_s8, %s728_s15  }
  0x1f   : > { %181 = sbr.rel (%p178_p3) target bundleno = 97 (0x61), region = 28  ;;  %s480_s4 = sshll.u32 (!%p178_p3), %s836_s3, 4 }
  0x20   : > { %s184_s5 = scalar_lea.sflag (!%p178_p3), [#allocation3], %s836_s3  ;;  %s187_s7 = scalar_lea.vmem (!%p178_p3), [#allocation2], %s480_s4 }
  0x24   : > { %692 = dma.done.wait (%p793_p8), %s184_s5, 256  }
  0x25   : > { %694 = vsyncadd (%p793_p8), %s184_s5, 4294967040  ;;  %s194_s25 = scalar_lea.sflag [#allocation6], %s836_s3  ;;  %s197_s26 = scalar_lea.vmem [#allocation5], %s480_s4 }
  0x26   : > { %696 = dma.done.wait (%p793_p8), %s194_s25, 256  }
  0x27   : > { %698 = vsyncadd (%p793_p8), %s194_s25, 4294967040  ;;  %v849_v0 = vld [vmem:[%s187_s7] sm:$0xff]  ;;  %v851_v1 = vld [vmem:[%s187_s7 + $0x8] sm:$0xff]  ;;  %s482_s27 = sshll.u32 %s836_s3, 5  ;;  %s490_s6 = sshll.u32 %s717_s12, 5 }
  0x28   : > { %v241_v2 = vand.u32 2147483647, %v849_v0  ;;  %v242_v3 = vand.u32 2147483647, %v851_v1  ;;  %v856_v8 = vld [vmem:[%s197_s26] sm:$0xff]  ;;  %v858_v9 = vld [vmem:[%s197_s26 + $0x8] sm:$0xff]  ;;  %s359_s16 = scalar_lea.hbm %s953_s2, %s490_s6 }
  0x29   : > { %v340_v10 = vadd.f32 %v858_v9, %v856_v8  ;;  %s868_s21 = scalar_lea.vmem [#allocation7], %s482_s27  ;;  %v289_v17 = vmul.f32 %v856_v8, %v849_v0  ;;  %v290_v18 = vmul.f32 %v858_v9, %v851_v1  ;;  %v287_v19 = vmax.f32 %v849_v0, 0.0  ;;  %s362_s20 = sshll.u32 %s359_s16, 4  ;;  %s363_s20 = int_to_ptr.hbm [resolvable:$true] %s362_s20 }
  0x2a   : > { %v243_v4 = vsub.f32 0.0, %v241_v2  ;;  %v244_v5 = vsub.f32 0.0, %v242_v3  ;;  %v288_v20 = vmax.f32 %v851_v1, 0.0  ;;  %vm281_vm10 = vcmp.ge.f32.partialorder %v849_v0, 0.0  ;;  %s360_s18 = sshll.u32 %s868_s21, 4  ;;  %s348_s28 = scalar_lea.sflag [#allocation4], %s836_s3  ;;  %s361_s18 = int_to_ptr.vmem [resolvable:$true] %s360_s18 }
  0x2b   : > { %342 = vst [vmem:[%s868_s21 + $0x10] sm:$0xff] %v340_v10  ;;  %v291_v27 = vsub.f32 %v287_v19, %v289_v17  ;;  %vm282_vm11 = vcmp.ge.f32.partialorder %v851_v1, 0.0  ;;  %s653_s19 = sshra.s32 %s363_s20, 4  ;;  %s659_s4 = scalar_lea.hbm %s953_s2, 64  ;;  %s654_s19 = int_to_ptr.hbm [resolvable:$true] %s653_s19 }
  0x2c   : > { %v245_v6 = vmul.f32 1.442695, %v243_v4  ;;  %v247_v7 = vmul.f32 1.442695, %v244_v5  ;;  %v292_v28 = vsub.f32 %v288_v20, %v290_v18  ;;  %s655_s12 = scalar_lea.hbm %s654_s19, 32  ;;  %p660_p7 = scmp.lt.s32.totalorder %s654_s19, %s953_s2 }
  0x2d   : > { %p656_p4 = scmp.ne.s32.totalorder %s654_s19, %s655_s12  ;;  %p661_p8 = scmp.lt.s32.totalorder %s659_s4, %s655_s12 }
  0x2e   : > { %563 = vpow2.f32 %v245_v6 }
  0x2f   : > { %565 = vpow2.f32 %v247_v7  ;;  %p657_p5 = pnand %p656_p4, %p797_p9  ;;  %p662_p10 = por %p661_p8, %p660_p7 }
  0x31   : > { %p658_p6 = pneg %p657_p5 }
  0x33   : > { %p663_p13 = pnand %p662_p10, %p658_p6 }
  0x34   : > { %v862_v11 = vpop.eup %563 }
  0x35   : > { %v864_v12 = vpop.eup %565  ;;  %v249_v13 = vadd.f32 1.0, %v862_v11  ;;  %v296_v15 = vmul.f32 -0.5, %v862_v11  ;;  %v299_v22 = vand.u32 2147483647, %v862_v11 }
  0x36   : > { %v250_v14 = vadd.f32 1.0, %v864_v12  ;;  %v305_v16 = vmul.f32 -0.5, %v864_v12  ;;  %v308_v24 = vand.u32 2147483647, %v864_v12 }
  0x37   : > { %567 = vrcp.f32 %v249_v13  ;;  %v297_v21 = vadd.f32 1.0, %v296_v15  ;;  %vm256_vm0 = vweird.f32 %v249_v13  ;;  %v260_v26 = vand.u32 2147483647, %v249_v13 }
  0x38   : > { %569 = vrcp.f32 %v250_v14  ;;  %v306_v23 = vadd.f32 1.0, %v305_v16  ;;  %v262_v31 = vand.u32 2147483648, %v249_v13  ;;  %vm271_vm1 = vweird.f32 %v250_v14 }
  0x39   : > { %571 = vlog2.f32 %v249_v13  ;;  %v298_v32 = vmul.f32 %v862_v11, %v297_v21  ;;  %v277_v35 = vand.u32 2147483648, %v250_v14  ;;  %vm882_vm2 = vcmp.lt.f32.partialorder %v299_v22, 0.0004427343 }
  0x3a   : > { %573 = vlog2.f32 %v250_v14  ;;  %v307_v37 = vmul.f32 %v864_v12, %v306_v23  ;;  %vm887_vm4 = vcmp.lt.f32.partialorder %v308_v24, 0.0004427343  ;;  %v275_v43 = vand.u32 2147483647, %v250_v14 }
  0x3b   : > { %v263_v48 = vor.u32 1.1754944e-38, %v262_v31  ;;  %vm261_vm7 = vcmp.eq.f32.partialorder %v260_v26, 8.507059e+37  ;;  %v278_v53 = vor.u32 1.1754944e-38, %v277_v35 }
  0x3c   : > { %vm276_vm9 = vcmp.eq.f32.partialorder %v275_v43, 8.507059e+37 }
  0x3d   : > { %v568_v25 = vpop.eup %567 }
  0x3e   : > { %v570_v29 = vpop.eup %569  ;;  %v252_v30 = vmul.f32 %v568_v25, %v249_v13  ;;  %vm257_vm3 = vweird.f32 %v568_v25 }
  0x3f   : > { %v572_v33 = vpop.eup %571  ;;  %v267_v34 = vmul.f32 %v570_v29, %v250_v14  ;;  %vm272_vm5 = vweird.f32 %v570_v29  ;;  %vm894_vm6 = vmor %vm256_vm0, %vm257_vm3 }
  0x40   : > { %v574_v38 = vpop.eup %573  ;;  %v253_v39 = vsub.f32 1.0, %v252_v30  ;;  %v295_v40 = vmul.f32 0.6931472, %v572_v33  ;;  %vm273_vm8 = vmor %vm271_vm1, %vm272_vm5 }
  0x41   : > { %v268_v42 = vsub.f32 1.0, %v267_v34  ;;  %v304_v44 = vmul.f32 0.6931472, %v574_v38 }
  0x42   : > { %v254_v45 = vmul.f32 %v568_v25, %v253_v39  ;;  %v301_v46 = vsel %vm882_vm2, %v298_v32, %v295_v40 }
  0x43   : > { %v269_v49 = vmul.f32 %v570_v29, %v268_v42  ;;  %v310_v50 = vsel %vm887_vm4, %v307_v37, %v304_v44  ;;  %v311_v51 = vadd.f32 %v301_v46, %v291_v27 }
  0x44   : > { %v255_v52 = vadd.f32 %v568_v25, %v254_v45  ;;  %v312_v54 = vadd.f32 %v310_v50, %v292_v28 }
  0x45   : > { %v270_v55 = vadd.f32 %v570_v29, %v269_v49  ;;  %v313_v56 = vsub.f32 0.0, %v311_v51 }
  0x46   : > { %v259_v57 = vsel %vm894_vm6, %v568_v25, %v255_v52  ;;  %v314_v58 = vsub.f32 0.0, %v312_v54 }
  0x47   : > { %v264_v59 = vsel %vm261_vm7, %v263_v48, %v259_v57  ;;  %v274_v60 = vsel %vm273_vm8, %v570_v29, %v270_v55  ;;  %v315_v61 = vmul.f32 1.442695, %v313_v56 }
  0x48   : > { %v279_v62 = vsel %vm276_vm9, %v278_v53, %v274_v60  ;;  %v283_v63 = vmul.f32 %v862_v11, %v264_v59  ;;  %v317_v2 = vmul.f32 1.442695, %v314_v58 }
  0x49   : > { %v284_v3 = vmul.f32 %v864_v12, %v279_v62  ;;  %575 = vpow2.f32 %v315_v61 }
  0x4a   : > { %v285_v4 = vsel %vm281_vm10, %v264_v59, %v283_v63  ;;  %577 = vpow2.f32 %v317_v2 }
  0x4b   : > { %v286_v5 = vsel %vm282_vm11, %v279_v62, %v284_v3  ;;  %v330_v6 = vmul.f32 %v285_v4, %v856_v8 }
  0x4c   : > { %v331_v0 = vmul.f32 %v286_v5, %v858_v9  ;;  %v336_v7 = vadd.f32 %v286_v5, %v285_v4 }
  0x4e   : > { %v332_v10 = vadd.f32 %v331_v0, %v330_v6  ;;  %338 = vst [vmem:[%s868_s21 + $0x8] sm:$0xff] %v336_v7 }
  0x4f   : > { %v576_v13 = vpop.eup %575 }
  0x50   : > { %v578_v1 = vpop.eup %577  ;;  %v319_v11 = vsub.f32 1.0, %v576_v13  ;;  %334 = vst [vmem:[%s868_s21] sm:$0xff] %v332_v10 }
  0x51   : > { %v320_v14 = vsub.f32 1.0, %v578_v1 }
  0x52   : > { %v321_v12 = vmax.f32 %v319_v11, 0.0 }
  0x53   : > { %v322_v15 = vmax.f32 %v320_v14, 0.0 }
  0x54   : > { %v323_v16 = vmul.f32 %v321_v12, %v321_v12 }
  0x55   : > { %v324_v17 = vmul.f32 %v322_v15, %v322_v15 }
  0x56   : > { %v325_v18 = vmul.f32 0.8, %v323_v16 }
  0x57   : > { %v326_v8 = vmul.f32 0.8, %v324_v17 }
  0x58   : > { %v327_v9 = vmul.f32 %v325_v18, %v311_v51 }
  0x59   : > { %v328_v19 = vmul.f32 %v326_v8, %v312_v54 }
  0x5b   : > { %v344_v20 = vadd.f32 %v328_v19, %v327_v9 }
  0x5d   : > { %346 = vst [vmem:[%s868_s21 + $0x18] sm:$0xff] %v344_v20 }
  0x5e   : > { %666 = shalt.err (!%p663_p13)
}
  0x5f   : > { %s729_s3 = smov 128   ;;  %s730_s25 = smov 8  }
  0x60   : > { %495 = dma.vmem_to_hbm [thread:$0]  (%p797_p9), %s361_s18, 512, %s363_s20, %s348_s28, %s729_s3, %s729_s3, %s730_s25  }
  0x61 PF: > { %s377_s26 = sand.u32 1, %s705_s9   ;;  %p505_p0 = pnand %p472_p12, %p804_p11 }
  0x62   : > { %s378_s27 = scalar_lea.sflag [#allocation4], %s377_s26 }
  0x63   : > { %p506_p1 = pneg %p505_p0 }
  0x65   : > { %700 = dma.done.wait (%p506_p1), %s378_s27, 512  }
  0x66   : > { %702 = vsyncadd (%p506_p1), %s378_s27, 4294966784  ;;  %s21_s14 = sadd.s32 1, %s725_s14   ;;  %s965_s9 = smov %s709_s10 }
  0x67   : > { %p18_p2 = scmp.ge.s32.totalorder %s21_s14, 4   ;;  %s966_s10 = smov %s713_s11 }
  0x68   : > { %s967_s11 = smov %s802_s23  ;;  %s968_s12 = smov %s721_s13 }
  0x69   : > { %s969_s13 = smov %s971_s17  ;;  %20 = sbr.rel (!%p18_p2) target bundleno = 8 (0x8), region = 90 }
  0x6e   :  { %384 = vsyncpa [#allocation3], 1 }
  0x6f   :  { %386 = vsyncpa [#allocation3 + $0x1], 1 }
  0x70   :  { %387 = vsyncpa [#allocation6], 1 }
  0x71   :  { %389 = vsyncpa [#allocation6 + $0x1], 1 }
  0x72   :  { %390 = vsyncpa [#allocation4], 1 }
  0x73   :  { %392 = vsyncpa [#allocation4 + $0x1], 1 }

</bundles_post_ra>
